<compile_context>
chip_gen: v7x
topology: tpu7x:2x2x1
jax: 0.10.0
libtpu: 0.0.40
codegen_flags: <defaults>
</compile_context>

<pallas_src>
import jax
import jax.numpy as jnp
from jax.experimental import pallas as pl
from jax.experimental.pallas import tpu as pltpu


def linear_kernel(x_ref, w_ref, b_ref, o_ref):
    """y[j, 0] = sum_k x[j, k] * w[0, k] + b   (OUT == 1).

    x_ref: (TB, IN) input tile, native x layout (batch on sublanes)
    w_ref: (1, IN)  weight row, resident across the grid
    b_ref: (1, 1)   bias scalar in SMEM
    o_ref: (TB, 1)  output column
    """
    x = x_ref[...].astype(jnp.float32)      # force f32 accumulation
    w = w_ref[...].astype(jnp.float32)      # (1, IN) broadcasts over batch rows
    # VPU multiply + XLU cross-lane reduce; no MXU for this degenerate GEMV.
    acc = jnp.sum(x * w, axis=1, keepdims=True)            # (TB, 1) f32
    o_ref[...] = (acc + b_ref[0, 0]).astype(o_ref.dtype)


def simple_model_forward(x, w, b, *, block_b=16384, use_pallas=None):
    """Equivalent of torch nn.Linear(10, 1): y = x @ W.T + b.

    x: (B, IN) float, w: (OUT, IN) with OUT == 1, b: (OUT,). Returns (B, OUT).
    """
    B, IN = x.shape
    OUT, IN_w = w.shape
    assert IN_w == IN and OUT == 1

    if use_pallas is None:
        # Below ~4K rows the fixed dispatch cost of a custom call dominates a
        # kernel whose useful work is tens of nanoseconds; let XLA fuse it.
        use_pallas = B >= 4096
    if (not use_pallas) or B < 8:
        return (x @ w.T + b).astype(x.dtype)

    # Sublane rule: the batch block dim must be a multiple of 8 (IN = 10 is the
    # full last dim, so the (8,128) lane rule is satisfied automatically).
    # VMEM cap: the (block_b, 10) tile lane-pads to 128 lanes in VMEM, so each
    # double-buffered input+output pair costs ~block_b * 2 KiB — cap block_b so
    # the footprint stays well inside v7x's 64 MiB physical VMEM.
    block_b = max(8, min(int(block_b), 24576))
    block_b = (block_b // 8) * 8
    block_b = min(block_b, max(8, (B // 8) * 8))   # never exceed the array dim
    num_tiles = pl.cdiv(B, block_b)                # partial tail tile is fine

    # Explicit VMEM budget sized to the actual (lane-padded, double-buffered)
    # buffers, never below the 32 MiB default and capped for v7x headroom.
    vmem_limit = int(min(max(block_b * 2048 + (2 << 20), 32 << 20), 52 << 20))

    b_sc = b.reshape(1, 1).astype(jnp.float32)

    y = pl.pallas_call(
        linear_kernel,
        out_shape=jax.ShapeDtypeStruct((B, OUT), x.dtype),
        grid=(num_tiles,),
        in_specs=[
            pl.BlockSpec((block_b, IN), lambda i: (i, 0)),        # x, native layout
            pl.BlockSpec((OUT, IN), lambda i: (0, 0)),            # weight, resident
            pl.BlockSpec(memory_space=pltpu.MemorySpace.SMEM),    # bias scalar
        ],
        out_specs=pl.BlockSpec((block_b, OUT), lambda i: (i, 0)),
        compiler_params=pltpu.CompilerParams(
            dimension_semantics=("parallel",),   # dual-TC sharding on v7x
            vmem_limit_bytes=vmem_limit,
        ),
    )(x, w, b_sc)
    return y


if __name__ == "__main__":
    key = jax.random.PRNGKey(0)
    kx, kw, kb, kx2 = jax.random.split(key, 4)

    IN, OUT = 10, 1
    # PyTorch-like uniform(-1/sqrt(IN), 1/sqrt(IN)) init, deterministic.
    bound = 1.0 / jnp.sqrt(jnp.float32(IN))
    w = jax.random.uniform(kw, (OUT, IN), dtype=jnp.float32, minval=-bound, maxval=bound)
    b = jax.random.uniform(kb, (OUT,), dtype=jnp.float32, minval=-bound, maxval=bound)

    # 1) The module's test shape (B=8): default heuristic takes the fused XLA
    #    path; also force the Pallas path at the same shape (single tile).
    B = 8
    x = jax.random.normal(kx, (B, IN), dtype=jnp.float32)
    y_ref = x @ w.T + b

    y_xla = simple_model_forward(x, w, b)                    # heuristic -> XLA
    y_pal = simple_model_forward(x, w, b, use_pallas=True)   # single-tile kernel
    jax.block_until_ready((y_xla, y_pal))
    assert y_xla.shape == (B, OUT) and y_pal.shape == (B, OUT)
    assert jnp.allclose(y_xla, y_ref, atol=1e-5, rtol=1e-5)
    assert jnp.allclose(y_pal, y_ref, atol=1e-5, rtol=1e-5)

    # 2) Gridded Pallas path with a non-divisible tail tile (no transpose, no
    #    padding copy): 200 rows, block_b=64 -> 4 tiles, last one partial.
    B2 = 200
    x2 = jax.random.normal(kx2, (B2, IN), dtype=jnp.float32)
    y2 = simple_model_forward(x2, w, b, block_b=64, use_pallas=True)
    jax.block_until_ready(y2)
    y2_ref = x2 @ w.T + b
    assert y2.shape == (B2, OUT)
    assert jnp.allclose(y2, y2_ref, atol=1e-5, rtol=1e-5)

    print("KERNEL_OK")
</pallas_src>

<mosaic_0001>
module attributes {stable_mosaic.version = 11 : i64} {
  func.func @linear_kernel(%arg0: i32, %arg1: memref<8x10xf32, #tpu.memory_space<vmem>>, %arg2: memref<1x10xf32, #tpu.memory_space<vmem>>, %arg3: memref<1x1xf32, #tpu.memory_space<smem>>, %arg4: memref<8x1xf32, #tpu.memory_space<vmem>>) attributes {dimension_semantics = [#tpu.dimension_semantics<parallel>], iteration_bounds = array<i64: 1>, scalar_prefetch = 0 : i64, scratch_operands = 0 : i64, tpu.core_type = #tpu.core_type<tc>, window_params = [{transform_indices = @transform_0, window_bounds = array<i64: 8, 10>}, {pipeline_mode = #tpu.pipeline_mode<synchronous>, transform_indices = @transform_1, window_bounds = array<i64: 1, 10>}, {transform_indices = @transform_2, window_bounds = array<i64: 1, 1>}, {transform_indices = @transform_3, window_bounds = array<i64: 8, 1>}]} {
    %c0 = arith.constant 0 : index
    %c0_0 = arith.constant 0 : index
    %0 = vector.load %arg1[%c0, %c0_0] : memref<8x10xf32, #tpu.memory_space<vmem>>, vector<8x10xf32>
    %c0_1 = arith.constant 0 : index
    %c0_2 = arith.constant 0 : index
    %1 = vector.load %arg2[%c0_1, %c0_2] : memref<1x10xf32, #tpu.memory_space<vmem>>, vector<1x10xf32>
    %2 = vector.broadcast %1 : vector<1x10xf32> to vector<8x10xf32>
    %3 = arith.mulf %0, %2 : vector<8x10xf32>
    %cst = arith.constant dense<0.000000e+00> : vector<8xf32>
    %4 = vector.multi_reduction <add>, %3, %cst [1] : vector<8x10xf32> to vector<8xf32>
    %5 = vector.shape_cast %4 : vector<8xf32> to vector<8x1xf32>
    %c0_3 = arith.constant 0 : index
    %c0_4 = arith.constant 0 : index
    %6 = memref.load %arg3[%c0_3, %c0_4] : memref<1x1xf32, #tpu.memory_space<smem>>
    %7 = vector.broadcast %6 : f32 to vector<8x1xf32>
    %8 = arith.addf %5, %7 : vector<8x1xf32>
    %c0_5 = arith.constant 0 : index
    %c0_6 = arith.constant 0 : index
    %9 = vector.load %arg4[%c0_5, %c0_6] : memref<8x1xf32, #tpu.memory_space<vmem>>, vector<8x1xf32>
    tpu.vector_store %arg4[%c0_5, %c0_6], %8 {strides = array<i32>} : memref<8x1xf32, #tpu.memory_space<vmem>>, vector<8x1xf32>,
    return
  }
  func.func @transform_0(%arg0: i32) -> (i32, i32) {
    %c0_i32 = arith.constant 0 : i32
    %c0_i32_0 = arith.constant 0 : i32
    return %arg0, %c0_i32 : i32, i32
  }
  func.func @transform_1(%arg0: i32) -> (i32, i32) {
    %c0_i32 = arith.constant 0 : i32
    %c0_i32_0 = arith.constant 0 : i32
    %c0_i32_1 = arith.constant 0 : i32
    return %c0_i32, %c0_i32_0 : i32, i32
  }
  func.func @transform_2(%arg0: i32) -> (i32, i32) {
    %c0_i32 = arith.constant 0 : i32
    %c0_i32_0 = arith.constant 0 : i32
    %c0_i32_1 = arith.constant 0 : i32
    return %c0_i32, %c0_i32_0 : i32, i32
  }
  func.func @transform_3(%arg0: i32) -> (i32, i32) {
    %c0_i32 = arith.constant 0 : i32
    %c0_i32_0 = arith.constant 0 : i32
    return %arg0, %c0_i32 : i32, i32
  }
}

</mosaic_0001>

<bundles_post_ra>
// kernel: tpu_custom_call.1
= control target key start
LH: loop header
LB: loop body
LE: loop exit
PB: predicated region body
PF: predicated region fallthrough
CT: control target
= control target key end

     0   :  { %9 = vsyncpa [#allocation4], 0  ;;  %s76_s12 = smov [#allocation3]   ;;  %s118_s0 = inlined_call_operand.hbm [shape: f32[8,10], index: 0, kind: input, shape index: {}]   ;;  %s119_s1 = inlined_call_operand.vmem [shape: f32[1,10], index: 1, kind: input, shape index: {}]   ;;  %s120_s2 = inlined_call_operand.<no memory space> [shape: f32[1,1], index: 2, kind: input, shape index: {}]   ;;  %s121_s3 = inlined_call_operand.vmem [shape: f32[8,1], index: 3, kind: output, shape index: {}]  }
   0x1   :  { %s16_s13 = sshll.u32 %s76_s12, 4  ;;  %s52_s16 = scalar_lea.hbm %s118_s0, 128  ;;  %s17_s13 = int_to_ptr.vmem [resolvable:$true] %s16_s13 }
   0x2   :  { %p53_p0 = scmp.ne.s32.totalorder %s118_s0, %s52_s16  ;;  %p56_p1 = scmp.lt.u32.totalorder %s52_s16, %s118_s0 }
   0x4   :  { %p58_p2 = pnand %p56_p1, %p53_p0 }
   0x6   :  { %61 = shalt.err (!%p58_p2)
}
   0x7   :  { %s62_s21 = scalar_lea.vmem %s17_s13, 128  ;;  %p67_p4 = scmp.lt.s32.totalorder %s17_s13, %s17_s13 }
   0x8   :  { %p63_p3 = scmp.ne.s32.totalorder %s17_s13, %s62_s21  ;;  %p68_p5 = scmp.lt.s32.totalorder %s62_s21, %s62_s21 }
   0xa   :  { %p69_p6 = por %p68_p5, %p67_p4 }
   0xc   :  { %p70_p7 = pnand %p69_p6, %p63_p3 }
   0xe   :  { %73 = shalt.err (!%p70_p7)
}
   0xf   :  { %19 = dma.hbm_to_vmem [thread:$0]  %s118_s0, 128, %s17_s13, [#allocation4]  }
  0x10   :  { %74 = dma.done.wait [#allocation4], 128  }
  0x11   :  { %75 = vsyncadd [#allocation4], 4294967168  ;;  %v27_v0 = vld [vmem:[#allocation3] sm:$0xff]  ;;  %vm36_vm0 = vcmask 80896   ;;  %v41_v4 = vstv %s120_s2  ;;  %vm43_vm1 = vcmask 7168  }
  0x12   :  { %v50_v1 = vld [vmem:[%s119_s1] ss:$0 sm:$0xff] }
  0x13   :  { %v35_v2 = vmul.f32 %v50_v1, %v27_v0 }
  0x15   :  { %v37_v3 = vsel %vm36_vm0, %v35_v2, 0.0 }
  0x16   :  { %38 = vadd.xlane.f32.xlu0 %v37_v3 }
  0xa3   :  { %v39_v5 = vpop.xlane.xlu0 %38 }
  0xa4   :  { %v42_v6 = vadd.f32 %v41_v4, %v39_v5 }
  0xa6   :  { %44 = vst.msk [vmem:[%s121_s3] sm:$0xff] %vm43_vm1, %v42_v6 }
  0xa7   :  { %49 = vsyncpa [#allocation4], 1 }

</bundles_post_ra>
